<compile_context>
chip_gen: v7x
topology: tpu7x:2x2x1
jax: 0.10.0
libtpu: 0.0.40
codegen_flags: <defaults>
</compile_context>

<pallas_src>
import functools

import jax
import jax.numpy as jnp
from jax.experimental import pallas as pl
from jax.experimental.pallas import tpu as pltpu


def _triplet_loss_kernel(a_ref, p_ref, n_ref, out_ref, *,
                         margin, block_rows, batch, ragged):
    """One grid step == one independent batch tile of `block_rows` rows.

    a_ref/p_ref/n_ref: VMEM (block_rows, D) input tiles
    out_ref:           VMEM (1, 1) f32 per-tile partial sum of exp(...)
    """
    a = a_ref[...].astype(jnp.float32)
    p = p_ref[...].astype(jnp.float32)
    n = n_ref[...].astype(jnp.float32)

    dpos = a - p
    dneg = a - n
    # Fused lane reduction: sum((a-p)^2 - (a-n)^2) == pos_dist - neg_dist.
    d = dpos * dpos - dneg * dneg
    arg = jnp.sum(d, axis=-1, keepdims=True) + jnp.float32(margin)   # (tb, 1)

    if ragged:
        # Only the last tile has invalid rows; mask the exp argument so
        # garbage edge rows contribute exactly 0 (exp(-1e30) -> 0) and no
        # inf/NaN ever enters the sum.  Emitted only when B % tb != 0.
        row = (pl.program_id(0) * block_rows
               + jax.lax.broadcasted_iota(jnp.int32, arg.shape, 0))
        arg = jnp.where(row < batch, arg, jnp.float32(-1e30))

    out_ref[...] = jnp.sum(jnp.exp(arg), axis=0, keepdims=True)       # (1, 1)


def _choose_block_rows(B, D, itemsize):
    """Pick a batch tile: ~1 MiB per input block, sublane-aligned."""
    target_block_bytes = 1 << 20
    tb = target_block_bytes // max(D * itemsize, 1)
    tb = max(8, min(int(tb), 2048))
    tb = (tb // 8) * 8
    if tb >= B:
        return B          # single block; block dim == full array dim is legal
    return tb


def triplet_loss(anchor, positive, negative, margin=1.0, block_rows=None):
    """anchor/positive/negative: (B, D). Returns scalar mean triplet loss."""
    B, D = anchor.shape
    itemsize = jnp.dtype(anchor.dtype).itemsize

    tb = _choose_block_rows(B, D, itemsize) if block_rows is None else block_rows
    if tb >= B:
        tb = B
    elif tb % 8 != 0:
        tb = max(8, (tb // 8) * 8)

    grid = (pl.cdiv(B, tb),)
    ragged = (B % tb) != 0

    kernel = functools.partial(
        _triplet_loss_kernel,
        margin=float(margin), block_rows=tb, batch=B, ragged=ragged)

    # Double-buffered inputs: 3 arrays x 2 buffers x (tb, D).
    block_bytes = tb * D * itemsize
    vmem_limit = int(min(max(6 * block_bytes + (2 << 20), 16 << 20), 40 << 20))

    cost = pl.CostEstimate(
        flops=int(6 * B * D + 2 * B),
        transcendentals=int(B),
        bytes_accessed=int(3 * B * D * itemsize + grid[0] * 4),
    )

    grid_spec = pl.GridSpec(
        grid=grid,
        in_specs=[
            pl.BlockSpec((tb, D), lambda i: (i, 0)),   # anchor tile
            pl.BlockSpec((tb, D), lambda i: (i, 0)),   # positive tile
            pl.BlockSpec((tb, D), lambda i: (i, 0)),   # negative tile
        ],
        out_specs=pl.BlockSpec((1, 1), lambda i: (i, 0)),
    )

    partials = pl.pallas_call(
        kernel,
        out_shape=jax.ShapeDtypeStruct((grid[0], 1), jnp.float32),
        grid_spec=grid_spec,
        compiler_params=pltpu.CompilerParams(
            dimension_semantics=("parallel",),      # tiles are independent
            vmem_limit_bytes=vmem_limit,
        ),
        cost_estimate=cost,
    )(anchor, positive, negative)

    # Tiny finalize in JAX (G scalars): mean over the true batch size.
    return jnp.sum(partials) / jnp.float32(B)


def _reference(anchor, positive, negative, margin):
    a = anchor.astype(jnp.float32)
    p = positive.astype(jnp.float32)
    n = negative.astype(jnp.float32)
    pos_d = jnp.sum((a - p) ** 2, axis=1)
    neg_d = jnp.sum((a - n) ** 2, axis=1)
    return jnp.mean(jnp.exp(pos_d - neg_d + margin))


if __name__ == "__main__":
    key = jax.random.PRNGKey(0)
    margin = 1.0

    # Case 1: small batch (B=8, D=32), single tile, D not a multiple of 128.
    ka, kp, kn = jax.random.split(key, 3)
    B, D = 8, 32
    anchor = 0.3 * jax.random.normal(ka, (B, D), dtype=jnp.float32)
    positive = 0.3 * jax.random.normal(kp, (B, D), dtype=jnp.float32)
    negative = 0.3 * jax.random.normal(kn, (B, D), dtype=jnp.float32)

    loss = triplet_loss(anchor, positive, negative, margin=margin)
    jax.block_until_ready(loss)
    ref = _reference(anchor, positive, negative, margin)
    assert loss.shape == ()
    assert jnp.allclose(loss, ref, rtol=1e-5, atol=1e-6), (loss, ref)

    # Case 2: ragged batch (B=40, D=40) with a small forced tile so the
    # partial last block + static row mask + multi-tile partials are used.
    kb = jax.random.split(key, 4)
    B2, D2 = 40, 40
    a2 = 0.3 * jax.random.normal(kb[0], (B2, D2), dtype=jnp.float32)
    p2 = 0.3 * jax.random.normal(kb[1], (B2, D2), dtype=jnp.float32)
    n2 = 0.3 * jax.random.normal(kb[2], (B2, D2), dtype=jnp.float32)

    loss2 = triplet_loss(a2, p2, n2, margin=margin, block_rows=16)
    jax.block_until_ready(loss2)
    ref2 = _reference(a2, p2, n2, margin)
    assert jnp.allclose(loss2, ref2, rtol=1e-5, atol=1e-6), (loss2, ref2)

    # Case 3: bf16 inputs stay bf16 in HBM (half the streaming bytes); the
    # kernel promotes to f32 in-register, matching an f32 reference on the
    # same bf16 values.
    kc = jax.random.split(kb[3], 3)
    B3, D3 = 24, 160
    a3 = (0.3 * jax.random.normal(kc[0], (B3, D3))).astype(jnp.bfloat16)
    p3 = (0.3 * jax.random.normal(kc[1], (B3, D3))).astype(jnp.bfloat16)
    n3 = (0.3 * jax.random.normal(kc[2], (B3, D3))).astype(jnp.bfloat16)

    loss3 = triplet_loss(a3, p3, n3, margin=margin)
    jax.block_until_ready(loss3)
    ref3 = _reference(a3, p3, n3, margin)
    assert jnp.allclose(loss3, ref3, rtol=1e-5, atol=1e-5), (loss3, ref3)

    print("KERNEL_OK")
</pallas_src>

<mosaic_0001>
module attributes {stable_mosaic.version = 11 : i64} {
  func.func @_triplet_loss_kernel(%arg0: i32, %arg1: memref<8x32xf32, #tpu.memory_space<vmem>>, %arg2: memref<8x32xf32, #tpu.memory_space<vmem>>, %arg3: memref<8x32xf32, #tpu.memory_space<vmem>>, %arg4: memref<1x1xf32, #tpu.memory_space<vmem>>) attributes {dimension_semantics = [#tpu.dimension_semantics<parallel>], iteration_bounds = array<i64: 1>, scalar_prefetch = 0 : i64, scratch_operands = 0 : i64, tpu.core_type = #tpu.core_type<tc>, window_params = [{transform_indices = @transform_0, window_bounds = array<i64: 8, 32>}, {transform_indices = @transform_1, window_bounds = array<i64: 8, 32>}, {transform_indices = @transform_2, window_bounds = array<i64: 8, 32>}, {transform_indices = @transform_3, window_bounds = array<i64: 1, 1>}]} {
    %c0 = arith.constant 0 : index
    %c0_0 = arith.constant 0 : index
    %0 = vector.load %arg1[%c0, %c0_0] : memref<8x32xf32, #tpu.memory_space<vmem>>, vector<8x32xf32>
    %c0_1 = arith.constant 0 : index
    %c0_2 = arith.constant 0 : index
    %1 = vector.load %arg2[%c0_1, %c0_2] : memref<8x32xf32, #tpu.memory_space<vmem>>, vector<8x32xf32>
    %c0_3 = arith.constant 0 : index
    %c0_4 = arith.constant 0 : index
    %2 = vector.load %arg3[%c0_3, %c0_4] : memref<8x32xf32, #tpu.memory_space<vmem>>, vector<8x32xf32>
    %3 = arith.subf %0, %1 : vector<8x32xf32>
    %4 = arith.subf %0, %2 : vector<8x32xf32>
    %5 = arith.mulf %3, %3 : vector<8x32xf32>
    %6 = arith.mulf %4, %4 : vector<8x32xf32>
    %7 = arith.subf %5, %6 : vector<8x32xf32>
    %cst = arith.constant dense<0.000000e+00> : vector<8xf32>
    %8 = vector.multi_reduction <add>, %7, %cst [1] : vector<8x32xf32> to vector<8xf32>
    %9 = vector.shape_cast %8 : vector<8xf32> to vector<8x1xf32>
    %cst_5 = arith.constant 1.000000e+00 : f32
    %10 = vector.broadcast %cst_5 : f32 to vector<8x1xf32>
    %11 = arith.addf %9, %10 : vector<8x1xf32>
    %12 = math.exp %11 : vector<8x1xf32>
    %cst_6 = arith.constant dense<0.000000e+00> : vector<1xf32>
    %13 = vector.multi_reduction <add>, %12, %cst_6 [0] : vector<8x1xf32> to vector<1xf32>
    %14 = vector.shape_cast %13 : vector<1xf32> to vector<1x1xf32>
    %c0_7 = arith.constant 0 : index
    %c0_8 = arith.constant 0 : index
    %15 = vector.load %arg4[%c0_7, %c0_8] : memref<1x1xf32, #tpu.memory_space<vmem>>, vector<1x1xf32>
    tpu.vector_store %arg4[%c0_7, %c0_8], %14 {strides = array<i32>} : memref<1x1xf32, #tpu.memory_space<vmem>>, vector<1x1xf32>,
    return
  }
  func.func @transform_0(%arg0: i32) -> (i32, i32) {
    %c0_i32 = arith.constant 0 : i32
    %c0_i32_0 = arith.constant 0 : i32
    return %arg0, %c0_i32 : i32, i32
  }
  func.func @transform_1(%arg0: i32) -> (i32, i32) {
    %c0_i32 = arith.constant 0 : i32
    %c0_i32_0 = arith.constant 0 : i32
    return %arg0, %c0_i32 : i32, i32
  }
  func.func @transform_2(%arg0: i32) -> (i32, i32) {
    %c0_i32 = arith.constant 0 : i32
    %c0_i32_0 = arith.constant 0 : i32
    return %arg0, %c0_i32 : i32, i32
  }
  func.func @transform_3(%arg0: i32) -> (i32, i32) {
    %c0_i32 = arith.constant 0 : i32
    %c0_i32_0 = arith.constant 0 : i32
    return %arg0, %c0_i32 : i32, i32
  }
}

</mosaic_0001>

<bundles_post_ra>
// kernel: tpu_custom_call.1
= control target key start
LH: loop header
LB: loop body
LE: loop exit
PB: predicated region body
PF: predicated region fallthrough
CT: control target
= control target key end

     0   :  { %8 = vsyncpa [#allocation3], 0  ;;  %s261_s0 = inlined_call_operand.hbm [shape: f32[8,32], index: 0, kind: input, shape index: {}]   ;;  %s262_s1 = inlined_call_operand.hbm [shape: f32[8,32], index: 1, kind: input, shape index: {}]   ;;  %s263_s2 = inlined_call_operand.hbm [shape: f32[8,32], index: 2, kind: input, shape index: {}]   ;;  %s264_s3 = inlined_call_operand.hbm [shape: f32[1,1], index: 3, kind: output, shape index: {}]  }
   0x1   :  { %9 = vsyncpa [#allocation6], 0 }
   0x2   :  { %10 = vsyncpa [#allocation4], 0  ;;  %s189_s12 = smov [#allocation5]   ;;  %s190_s14 = smov [#allocation2]  }
   0x3   :  { %s27_s13 = sshll.u32 %s189_s12, 4  ;;  %s17_s15 = sshll.u32 %s190_s14, 4  ;;  %s28_s13 = int_to_ptr.vmem [resolvable:$true] %s27_s13  ;;  %s18_s15 = int_to_ptr.vmem [resolvable:$true] %s17_s15 }
   0x4   :  { %s95_s18 = scalar_lea.hbm %s262_s1, 128 }
   0x5   :  { %p96_p0 = scmp.ne.s32.totalorder %s262_s1, %s95_s18  ;;  %p99_p1 = scmp.lt.u32.totalorder %s95_s18, %s262_s1 }
   0x7   :  { %p101_p2 = pnand %p99_p1, %p96_p0 }
   0x9   :  { %104 = shalt.err (!%p101_p2)
}
   0xa   :  { %s105_s23 = scalar_lea.vmem %s28_s13, 128  ;;  %p110_p4 = scmp.lt.s32.totalorder %s28_s13, %s28_s13 }
   0xb   :  { %p106_p3 = scmp.ne.s32.totalorder %s28_s13, %s105_s23  ;;  %p111_p5 = scmp.lt.s32.totalorder %s105_s23, %s105_s23 }
   0xd   :  { %p112_p6 = por %p111_p5, %p110_p4 }
   0xf   :  { %p113_p7 = pnand %p112_p6, %p106_p3 }
  0x11   :  { %116 = shalt.err (!%p113_p7)
}
  0x12   :  { %30 = dma.hbm_to_vmem [thread:$0]  %s262_s1, 128, %s28_s13, [#allocation6]  }
  0x13   :  { %s117_s28 = scalar_lea.hbm %s261_s0, 128 }
  0x14   :  { %p118_p8 = scmp.ne.s32.totalorder %s261_s0, %s117_s28  ;;  %p121_p9 = scmp.lt.u32.totalorder %s117_s28, %s261_s0 }
  0x16   :  { %p123_p10 = pnand %p121_p9, %p118_p8 }
  0x18   :  { %126 = shalt.err (!%p123_p10)
}
  0x19   :  { %s127_s6 = scalar_lea.vmem %s18_s15, 128  ;;  %p132_p12 = scmp.lt.s32.totalorder %s18_s15, %s18_s15 }
  0x1a   :  { %p128_p11 = scmp.ne.s32.totalorder %s18_s15, %s127_s6  ;;  %p133_p13 = scmp.lt.s32.totalorder %s127_s6, %s127_s6 }
  0x1c   :  { %p134_p0 = por %p133_p13, %p132_p12 }
  0x1e   :  { %p135_p1 = pnand %p134_p0, %p128_p11 }
  0x20   :  { %138 = shalt.err (!%p135_p1)
}
  0x21   :  { %20 = dma.hbm_to_vmem [thread:$0]  %s261_s0, 128, %s18_s15, [#allocation3]  }
  0x22   :  { %s191_s8 = smov [#allocation7]   ;;  %s139_s12 = scalar_lea.hbm %s263_s2, 128 }
  0x23   :  { %s37_s9 = sshll.u32 %s191_s8, 4  ;;  %p140_p2 = scmp.ne.s32.totalorder %s263_s2, %s139_s12  ;;  %s38_s9 = int_to_ptr.vmem [resolvable:$true] %s37_s9 }
  0x24   :  { %p143_p3 = scmp.lt.u32.totalorder %s139_s12, %s263_s2 }
  0x26   :  { %p145_p4 = pnand %p143_p3, %p140_p2 }
  0x28   :  { %148 = shalt.err (!%p145_p4)
}
  0x29   :  { %s149_s18 = scalar_lea.vmem %s38_s9, 128  ;;  %p154_p6 = scmp.lt.s32.totalorder %s38_s9, %s38_s9 }
  0x2a   :  { %p150_p5 = scmp.ne.s32.totalorder %s38_s9, %s149_s18  ;;  %p155_p7 = scmp.lt.s32.totalorder %s149_s18, %s149_s18 }
  0x2c   :  { %p156_p8 = por %p155_p7, %p154_p6 }
  0x2e   :  { %p157_p9 = pnand %p156_p8, %p150_p5 }
  0x30   :  { %160 = shalt.err (!%p157_p9)
}
  0x31   :  { %40 = dma.hbm_to_vmem [thread:$0]  %s263_s2, 128, %s38_s9, [#allocation6]  }
  0x32   :  { %183 = dma.done.wait [#allocation3], 128  }
  0x33   :  { %184 = vsyncadd [#allocation3], 4294967168 }
  0x34   :  { %185 = dma.done.wait [#allocation6], 256  }
  0x35   :  { %186 = vsyncadd [#allocation6], 4294967040  ;;  %v50_v0 = vld [vmem:[#allocation2] sm:$0xff]  ;;  %v51_v1 = vld [vmem:[#allocation5] sm:$0xff]  ;;  %vm58_vm0 = vcmask 261120   ;;  %s192_s2 = smov [#allocation8]  }
  0x36   :  { %v52_v2 = vld [vmem:[#allocation7] sm:$0xff]  ;;  %v53_v3 = vsub.f32 %v50_v0, %v51_v1  ;;  %s79_s19 = sshll.u32 %s192_s2, 4  ;;  %vm71_vm1 = vcmask 0   ;;  %s80_s19 = int_to_ptr.vmem [resolvable:$true] %s79_s19 }
  0x37   :  { %v54_v4 = vsub.f32 %v50_v0, %v52_v2  ;;  %s161_s20 = scalar_lea.vmem %s80_s19, 16  ;;  %s165_s21 = scalar_lea.vmem %s80_s19, 32 }
  0x38   :  { %v55_v5 = vmul.f32 %v53_v3, %v53_v3  ;;  %p162_p10 = scmp.ne.s32.totalorder %s80_s19, %s161_s20  ;;  %p166_p11 = scmp.lt.s32.totalorder %s80_s19, %s80_s19 }
  0x39   :  { %v56_v6 = vmul.f32 %v54_v4, %v54_v4  ;;  %p167_p12 = scmp.lt.s32.totalorder %s165_s21, %s161_s20 }
  0x3b   :  { %v57_v7 = vsub.f32 %v55_v5, %v56_v6  ;;  %p168_p13 = por %p167_p12, %p166_p11 }
  0x3d   :  { %v59_v8 = vsel %vm58_vm0, %v57_v7, 0.0  ;;  %p169_p0 = pnand %p168_p13, %p162_p10 }
  0x3e   :  { %60 = vadd.xlane.f32.xlu0 %v59_v8 }
  0xcb   :  { %v61_v9 = vpop.xlane.xlu0 %60 }
  0xcc   :  { %v62_v10 = vadd.f32 1.0, %v61_v9 }
  0xce   :  { %v63_v11 = vmul.f32 1.442695, %v62_v10 }
  0xd0   :  { %93 = vpow2.f32 %v63_v11 }
  0xda   :  { %v94_v12 = vpop.eup %93 }
  0xdb   :  { %v65_v13 = vrot.slane %v94_v12, 4 }
  0xdd   :  { %v66_v14 = vadd.f32 %v94_v12, %v65_v13 }
  0xdf   :  { %v67_v15 = vrot.slane %v66_v14, 2 }
  0xe1   :  { %v68_v16 = vadd.f32 %v67_v15, %v66_v14 }
  0xe3   :  { %v69_v17 = vrot.slane %v68_v16, 1 }
  0xe5   :  { %v70_v18 = vadd.f32 %v69_v17, %v68_v16 }
  0xe7   :  { %72 = vst.msk [vmem:[#allocation8] sm:$0x1] %vm71_vm1, %v70_v18 }
  0xe8   :  { %172 = shalt.err (!%p169_p0)
}
  0xe9   :  { %s173_s24 = scalar_lea.hbm %s264_s3, 16 }
  0xea   :  { %p174_p1 = scmp.ne.s32.totalorder %s264_s3, %s173_s24  ;;  %p177_p2 = scmp.lt.u32.totalorder %s173_s24, %s264_s3 }
  0xec   :  { %p179_p3 = pnand %p177_p2, %p174_p1 }
  0xee   :  { %182 = shalt.err (!%p179_p3)
}
  0xef   :  { %82 = dma.vmem_to_hbm [thread:$0]  %s80_s19, 16, %s264_s3, [#allocation4]  }
  0xf0   :  { %187 = dma.done.wait [#allocation4], 16  }
  0xf1   :  { %188 = vsyncadd [#allocation4], 4294967280 }
  0xf2   :  { %86 = vsyncpa [#allocation3], 1 }
  0xf3   :  { %87 = vsyncpa [#allocation6], 1 }
  0xf4   :  { %88 = vsyncpa [#allocation4], 1 }

</bundles_post_ra>
